<compile_context>
chip_gen: v6e
topology: v6e:2x2x1
jax: 0.10.0
libtpu: 0.0.40
codegen_flags: <defaults>
</compile_context>

<pallas_src>
import functools
from math import sqrt

import jax
import jax.numpy as jnp
from jax.experimental import pallas as pl
from jax.experimental.pallas import tpu as pltpu

# ---------------- configuration (small, consistent with the module) ---------
BATCH = 2
SEQLEN = 8
DIM = 32
N_HEADS = 4
HEAD_DIM = DIM // N_HEADS


# ------------------------------ Pallas kernel -------------------------------
def attention2_kernel(x_ref, wbig_ref, wo_ref, cos_ref, sin_ref, neg_mask_ref,
                      o_ref, attn_scratch, *, n_heads, head_dim):
    """Single-step fused QKV + RoPE + block-causal attention + output proj.

    x_ref:        (B*S, D)   flattened input slab
    wbig_ref:     (D, 5D)    [Wq^T | Wk^T | Wv^T | Wq^T·P | Wk^T·P]
    wo_ref:       (D, D)     output projection (pre-transposed)
    cos/sin_ref:  (B*S, D)   RoPE tables (duplicated per pair, per head, per batch)
    neg_mask_ref: (B*S, B*S) 0 where attention allowed, -1e9 otherwise
    attn_scratch: (B*S, D)   VMEM scratch collecting per-head outputs
    """
    dim = n_heads * head_dim
    x = x_ref[...]                                                      # (BS, D)

    # --- one fused MXU matmul: q, k, v and the pre-rotated q·P, k·P ---
    big = jnp.dot(x, wbig_ref[...], preferred_element_type=jnp.float32)  # (BS, 5D)
    q = big[:, 0 * dim:1 * dim]
    k = big[:, 1 * dim:2 * dim]
    v = big[:, 2 * dim:3 * dim]
    qp = big[:, 3 * dim:4 * dim]      # equals q @ P (rotation folded into weights)
    kp = big[:, 4 * dim:5 * dim]      # equals k @ P

    # --- rotary embedding (pure VPU; no in-kernel rotation matmul) ---
    cos = cos_ref[...]
    sin = sin_ref[...]
    q_rot = q * cos + qp * sin
    k_rot = k * cos + kp * sin

    neg_mask = neg_mask_ref[...]      # hoisted: already scaled by -1e9
    scale = 1.0 / sqrt(head_dim)

    # Static loop over heads; results go straight into the scratch slab
    # (no lane-axis concatenate).
    for h in range(n_heads):
        lo = h * head_dim
        hi = lo + head_dim
        qh = q_rot[:, lo:hi]          # (BS, hd)
        kh = k_rot[:, lo:hi]
        vh = v[:, lo:hi]

        s = jnp.dot(qh, kh.T, preferred_element_type=jnp.float32) * scale  # (BS, BS)
        s = s + neg_mask
        # softmax in float32 (matches F.softmax(scores.float(), dim=-1))
        s = s - jnp.max(s, axis=-1, keepdims=True)
        p = jnp.exp(s)
        p = p * pl.reciprocal(jnp.sum(p, axis=-1, keepdims=True), approx=False)
        attn_scratch[:, lo:hi] = jnp.dot(p, vh, preferred_element_type=jnp.float32)

    out = jnp.dot(attn_scratch[...], wo_ref[...], preferred_element_type=jnp.float32)
    o_ref[...] = out.astype(o_ref.dtype)


def attention2_pallas(x, wq, wk, wv, wo, cos_full, sin_full, rot_full, neg_mask):
    """Wrapper: builds the fused weight / RoPE / mask operands and calls Pallas."""
    B, S, D = x.shape
    BS = B * S
    x_flat = x.reshape(BS, D)

    # Fold the pair-rotation matrix P into the Q/K weights (exact +/- column
    # permutation) and fuse everything into one (D, 5D) weight.
    w_big = jnp.concatenate(
        [wq.T, wk.T, wv.T, wq.T @ rot_full, wk.T @ rot_full], axis=1)     # (D, 5D)
    cos_bs = jnp.tile(cos_full, (B, 1))                                   # (BS, D)
    sin_bs = jnp.tile(sin_full, (B, 1))

    kernel = functools.partial(attention2_kernel,
                               n_heads=N_HEADS, head_dim=HEAD_DIM)

    vmem_spec = pl.BlockSpec(memory_space=pltpu.MemorySpace.VMEM)

    flops = (2 * BS * (5 * D) * D                       # fused qkv(+rot) matmul
             + N_HEADS * 2 * (2 * BS * BS * HEAD_DIM)   # scores + p@v per head
             + 2 * BS * D * D)                          # output projection
    bytes_accessed = 4 * (x_flat.size + w_big.size + wo.size + cos_bs.size
                          + sin_bs.size + neg_mask.size + BS * D)

    out_flat = pl.pallas_call(
        kernel,
        out_shape=jax.ShapeDtypeStruct((BS, D), x.dtype),
        in_specs=[vmem_spec] * 6,
        out_specs=vmem_spec,
        scratch_shapes=[pltpu.VMEM((BS, D), jnp.float32)],
        cost_estimate=pl.CostEstimate(
            flops=flops,
            transcendentals=N_HEADS * BS * BS,
            bytes_accessed=bytes_accessed),
    )(x_flat, w_big, wo.T, cos_bs, sin_bs, neg_mask)

    return out_flat.reshape(B, S, D)


# --------------------------- parameter / input setup -------------------------
def xavier_uniform(key, out_dim, in_dim):
    bound = sqrt(6.0 / (in_dim + out_dim))
    return jax.random.uniform(key, (out_dim, in_dim), jnp.float32, -bound, bound)


def make_rope_tables(seqlen, head_dim, n_heads, base=10000.0):
    # freqs_cis = polar(1, pos * base^(-2i/d)); cos/sin duplicated per pair,
    # then tiled across heads so they broadcast over the flat (S, D) q/k.
    inv_freq = 1.0 / (base ** (jnp.arange(0, head_dim, 2, dtype=jnp.float32) / head_dim))
    angles = jnp.outer(jnp.arange(seqlen, dtype=jnp.float32), inv_freq)   # (S, hd/2)
    cos = jnp.repeat(jnp.cos(angles), 2, axis=-1)                         # (S, hd)
    sin = jnp.repeat(jnp.sin(angles), 2, axis=-1)
    cos_full = jnp.tile(cos, (1, n_heads))                                # (S, D)
    sin_full = jnp.tile(sin, (1, n_heads))
    return angles, cos_full, sin_full


def make_pair_rotation(head_dim, n_heads):
    # (q @ P)[2j] = -q[2j+1], (q @ P)[2j+1] = q[2j]
    p = jnp.zeros((head_dim, head_dim), jnp.float32)
    idx = jnp.arange(0, head_dim, 2)
    p = p.at[idx + 1, idx].set(-1.0)
    p = p.at[idx, idx + 1].set(1.0)
    return jnp.kron(jnp.eye(n_heads, dtype=jnp.float32), p)               # (D, D)


def make_block_causal_neg_mask(batch, seqlen):
    # 0 where (same batch AND key_pos <= query_pos), -1e9 otherwise.
    idx = jnp.arange(batch * seqlen)
    b = idx // seqlen
    s = idx % seqlen
    allowed = (b[:, None] == b[None, :]) & (s[None, :] <= s[:, None])
    return jnp.where(allowed, 0.0, -1e9).astype(jnp.float32)              # (BS, BS)


# --------------------------- pure-JAX reference ------------------------------
def ref_forward(x, wq, wk, wv, wo, angles, mask):
    B, S, D = x.shape
    xq = x @ wq.T
    xk = x @ wk.T
    xv = x @ wv.T
    xq = xq.reshape(B, S, N_HEADS, HEAD_DIM)
    xk = xk.reshape(B, S, N_HEADS, HEAD_DIM)
    xv = xv.reshape(B, S, N_HEADS, HEAD_DIM)

    freqs_cis = jnp.exp(1j * angles.astype(jnp.complex64))                # (S, hd/2)

    def rope(t):
        tc = t.reshape(B, S, N_HEADS, HEAD_DIM // 2, 2)
        tc = tc[..., 0] + 1j * tc[..., 1]
        tc = tc * freqs_cis[None, :, None, :]
        return jnp.stack([tc.real, tc.imag], axis=-1).reshape(B, S, N_HEADS, HEAD_DIM)

    xq, xk = rope(xq), rope(xk)
    xq, xk, xv = (t.transpose(0, 2, 1, 3) for t in (xq, xk, xv))
    scores = (xq @ xk.transpose(0, 1, 3, 2)) / sqrt(HEAD_DIM)
    scores = scores + mask * (-1e9)
    scores = jax.nn.softmax(scores.astype(jnp.float32), axis=-1)
    out = scores @ xv
    out = out.transpose(0, 2, 1, 3).reshape(B, S, D)
    return out @ wo.T


# ------------------------------------ main -----------------------------------
if __name__ == "__main__":
    key = jax.random.PRNGKey(0)
    kx, kq, kk, kv, ko = jax.random.split(key, 5)

    x = jax.random.normal(kx, (BATCH, SEQLEN, DIM), jnp.float32)
    wq = xavier_uniform(kq, DIM, DIM)
    wk = xavier_uniform(kk, DIM, DIM)
    wv = xavier_uniform(kv, DIM, DIM)
    wo = xavier_uniform(ko, DIM, DIM)

    angles, cos_full, sin_full = make_rope_tables(SEQLEN, HEAD_DIM, N_HEADS)
    rot_full = make_pair_rotation(HEAD_DIM, N_HEADS)
    neg_mask = make_block_causal_neg_mask(BATCH, SEQLEN)
    # reference-style causal mask: 1.0 where attention is NOT allowed
    causal = jnp.triu(jnp.ones((SEQLEN, SEQLEN), jnp.float32), k=1)

    out = attention2_pallas(x, wq, wk, wv, wo,
                            cos_full, sin_full, rot_full, neg_mask)
    jax.block_until_ready(out)

    ref = ref_forward(x, wq, wk, wv, wo, angles, causal)
    assert jnp.allclose(out, ref, atol=1e-4, rtol=1e-4), \
        f"max abs diff {jnp.max(jnp.abs(out - ref))}"

    print("KERNEL_OK")
</pallas_src>

<mosaic_0001>
module attributes {stable_mosaic.version = 11 : i64} {
  func.func @attention2_kernel(%arg0: memref<16x32xf32, #tpu.memory_space<vmem>>, %arg1: memref<32x160xf32, #tpu.memory_space<vmem>>, %arg2: memref<32x32xf32, #tpu.memory_space<vmem>>, %arg3: memref<16x32xf32, #tpu.memory_space<vmem>>, %arg4: memref<16x32xf32, #tpu.memory_space<vmem>>, %arg5: memref<16x16xf32, #tpu.memory_space<vmem>>, %arg6: memref<16x32xf32, #tpu.memory_space<vmem>>, %arg7: memref<16x32xf32, #tpu.memory_space<vmem>>) attributes {dimension_semantics = [], scalar_prefetch = 0 : i64, scratch_operands = 1 : i64, tpu.core_type = #tpu.core_type<tc>} {
    %c0 = arith.constant 0 : index
    %c0_0 = arith.constant 0 : index
    %0 = vector.load %arg0[%c0, %c0_0] : memref<16x32xf32, #tpu.memory_space<vmem>>, vector<16x32xf32>
    %c0_1 = arith.constant 0 : index
    %c0_2 = arith.constant 0 : index
    %1 = vector.load %arg1[%c0_1, %c0_2] : memref<32x160xf32, #tpu.memory_space<vmem>>, vector<32x160xf32>
    %cst = arith.constant dense<0.000000e+00> : vector<16x160xf32>
    %2 = tpu.matmul %0, %1, %cst {dimension_numbers = #tpu.dot_dimension_numbers<[1], [0], [0], [1], [0, 0, 1, 1], [], []>} : vector<16x32xf32>, vector<32x160xf32>, vector<16x160xf32> -> vector<16x160xf32>
    %3 = vector.extract_strided_slice %2 {offsets = [0, 0], sizes = [16, 32], strides = [1, 1]} : vector<16x160xf32> to vector<16x32xf32>
    %4 = vector.extract_strided_slice %2 {offsets = [0, 32], sizes = [16, 32], strides = [1, 1]} : vector<16x160xf32> to vector<16x32xf32>
    %5 = vector.extract_strided_slice %2 {offsets = [0, 64], sizes = [16, 32], strides = [1, 1]} : vector<16x160xf32> to vector<16x32xf32>
    %6 = vector.extract_strided_slice %2 {offsets = [0, 96], sizes = [16, 32], strides = [1, 1]} : vector<16x160xf32> to vector<16x32xf32>
    %7 = vector.extract_strided_slice %2 {offsets = [0, 128], sizes = [16, 32], strides = [1, 1]} : vector<16x160xf32> to vector<16x32xf32>
    %c0_3 = arith.constant 0 : index
    %c0_4 = arith.constant 0 : index
    %8 = vector.load %arg3[%c0_3, %c0_4] : memref<16x32xf32, #tpu.memory_space<vmem>>, vector<16x32xf32>
    %c0_5 = arith.constant 0 : index
    %c0_6 = arith.constant 0 : index
    %9 = vector.load %arg4[%c0_5, %c0_6] : memref<16x32xf32, #tpu.memory_space<vmem>>, vector<16x32xf32>
    %10 = arith.mulf %3, %8 : vector<16x32xf32>
    %11 = arith.mulf %6, %9 : vector<16x32xf32>
    %12 = arith.addf %10, %11 : vector<16x32xf32>
    %13 = arith.mulf %4, %8 : vector<16x32xf32>
    %14 = arith.mulf %7, %9 : vector<16x32xf32>
    %15 = arith.addf %13, %14 : vector<16x32xf32>
    %c0_7 = arith.constant 0 : index
    %c0_8 = arith.constant 0 : index
    %16 = vector.load %arg5[%c0_7, %c0_8] : memref<16x16xf32, #tpu.memory_space<vmem>>, vector<16x16xf32>
    %17 = vector.extract_strided_slice %12 {offsets = [0, 0], sizes = [16, 8], strides = [1, 1]} : vector<16x32xf32> to vector<16x8xf32>
    %18 = vector.extract_strided_slice %15 {offsets = [0, 0], sizes = [16, 8], strides = [1, 1]} : vector<16x32xf32> to vector<16x8xf32>
    %19 = vector.extract_strided_slice %5 {offsets = [0, 0], sizes = [16, 8], strides = [1, 1]} : vector<16x32xf32> to vector<16x8xf32>
    %20 = tpu.transpose %18, [1, 0] : vector<16x8xf32> -> vector<8x16xf32>
    %cst_9 = arith.constant dense<0.000000e+00> : vector<16x16xf32>
    %21 = tpu.matmul %17, %20, %cst_9 {dimension_numbers = #tpu.dot_dimension_numbers<[1], [0], [0], [1], [0, 0, 1, 1], [], []>} : vector<16x8xf32>, vector<8x16xf32>, vector<16x16xf32> -> vector<16x16xf32>
    %cst_10 = arith.constant 0.353553385 : f32
    %22 = vector.broadcast %cst_10 : f32 to vector<16x16xf32>
    %23 = arith.mulf %21, %22 : vector<16x16xf32>
    %24 = arith.addf %23, %16 : vector<16x16xf32>
    %cst_11 = arith.constant dense<0xFF800000> : vector<16xf32>
    %25 = vector.multi_reduction <maximumf>, %24, %cst_11 [1] : vector<16x16xf32> to vector<16xf32>
    %26 = vector.shape_cast %25 : vector<16xf32> to vector<16x1xf32>
    %27 = vector.broadcast %26 : vector<16x1xf32> to vector<16x16xf32>
    %28 = arith.subf %24, %27 : vector<16x16xf32>
    %29 = math.exp %28 : vector<16x16xf32>
    %cst_12 = arith.constant dense<0.000000e+00> : vector<16xf32>
    %30 = vector.multi_reduction <add>, %29, %cst_12 [1] : vector<16x16xf32> to vector<16xf32>
    %31 = vector.shape_cast %30 : vector<16xf32> to vector<16x1xf32>
    %32 = tpu.reciprocal %31 : vector<16x1xf32> -> vector<16x1xf32>
    %33 = vector.broadcast %32 : vector<16x1xf32> to vector<16x16xf32>
    %34 = arith.mulf %29, %33 : vector<16x16xf32>
    %cst_13 = arith.constant dense<0.000000e+00> : vector<16x8xf32>
    %35 = tpu.matmul %34, %19, %cst_13 {dimension_numbers = #tpu.dot_dimension_numbers<[1], [0], [0], [1], [0, 0, 1, 1], [], []>} : vector<16x16xf32>, vector<16x8xf32>, vector<16x8xf32> -> vector<16x8xf32>
    %c0_14 = arith.constant 0 : index
    %c0_15 = arith.constant 0 : index
    %36 = vector.load %arg7[%c0_14, %c0_15] : memref<16x32xf32, #tpu.memory_space<vmem>>, vector<16x8xf32>
    tpu.vector_store %arg7[%c0_14, %c0_15], %35 {strides = array<i32>} : memref<16x32xf32, #tpu.memory_space<vmem>>, vector<16x8xf32>,
    %37 = vector.extract_strided_slice %12 {offsets = [0, 8], sizes = [16, 8], strides = [1, 1]} : vector<16x32xf32> to vector<16x8xf32>
    %38 = vector.extract_strided_slice %15 {offsets = [0, 8], sizes = [16, 8], strides = [1, 1]} : vector<16x32xf32> to vector<16x8xf32>
    %39 = vector.extract_strided_slice %5 {offsets = [0, 8], sizes = [16, 8], strides = [1, 1]} : vector<16x32xf32> to vector<16x8xf32>
    %40 = tpu.transpose %38, [1, 0] : vector<16x8xf32> -> vector<8x16xf32>
    %cst_16 = arith.constant dense<0.000000e+00> : vector<16x16xf32>
    %41 = tpu.matmul %37, %40, %cst_16 {dimension_numbers = #tpu.dot_dimension_numbers<[1], [0], [0], [1], [0, 0, 1, 1], [], []>} : vector<16x8xf32>, vector<8x16xf32>, vector<16x16xf32> -> vector<16x16xf32>
    %cst_17 = arith.constant 0.353553385 : f32
    %42 = vector.broadcast %cst_17 : f32 to vector<16x16xf32>
    %43 = arith.mulf %41, %42 : vector<16x16xf32>
    %44 = arith.addf %43, %16 : vector<16x16xf32>
    %cst_18 = arith.constant dense<0xFF800000> : vector<16xf32>
    %45 = vector.multi_reduction <maximumf>, %44, %cst_18 [1] : vector<16x16xf32> to vector<16xf32>
    %46 = vector.shape_cast %45 : vector<16xf32> to vector<16x1xf32>
    %47 = vector.broadcast %46 : vector<16x1xf32> to vector<16x16xf32>
    %48 = arith.subf %44, %47 : vector<16x16xf32>
    %49 = math.exp %48 : vector<16x16xf32>
    %cst_19 = arith.constant dense<0.000000e+00> : vector<16xf32>
    %50 = vector.multi_reduction <add>, %49, %cst_19 [1] : vector<16x16xf32> to vector<16xf32>
    %51 = vector.shape_cast %50 : vector<16xf32> to vector<16x1xf32>
    %52 = tpu.reciprocal %51 : vector<16x1xf32> -> vector<16x1xf32>
    %53 = vector.broadcast %52 : vector<16x1xf32> to vector<16x16xf32>
    %54 = arith.mulf %49, %53 : vector<16x16xf32>
    %cst_20 = arith.constant dense<0.000000e+00> : vector<16x8xf32>
    %55 = tpu.matmul %54, %39, %cst_20 {dimension_numbers = #tpu.dot_dimension_numbers<[1], [0], [0], [1], [0, 0, 1, 1], [], []>} : vector<16x16xf32>, vector<16x8xf32>, vector<16x8xf32> -> vector<16x8xf32>
    %c0_21 = arith.constant 0 : index
    %c8 = arith.constant 8 : index
    %56 = vector.load %arg7[%c0_21, %c8] : memref<16x32xf32, #tpu.memory_space<vmem>>, vector<16x8xf32>
    tpu.vector_store %arg7[%c0_21, %c8], %55 {strides = array<i32>} : memref<16x32xf32, #tpu.memory_space<vmem>>, vector<16x8xf32>,
    %57 = vector.extract_strided_slice %12 {offsets = [0, 16], sizes = [16, 8], strides = [1, 1]} : vector<16x32xf32> to vector<16x8xf32>
    %58 = vector.extract_strided_slice %15 {offsets = [0, 16], sizes = [16, 8], strides = [1, 1]} : vector<16x32xf32> to vector<16x8xf32>
    %59 = vector.extract_strided_slice %5 {offsets = [0, 16], sizes = [16, 8], strides = [1, 1]} : vector<16x32xf32> to vector<16x8xf32>
    %60 = tpu.transpose %58, [1, 0] : vector<16x8xf32> -> vector<8x16xf32>
    %cst_22 = arith.constant dense<0.000000e+00> : vector<16x16xf32>
    %61 = tpu.matmul %57, %60, %cst_22 {dimension_numbers = #tpu.dot_dimension_numbers<[1], [0], [0], [1], [0, 0, 1, 1], [], []>} : vector<16x8xf32>, vector<8x16xf32>, vector<16x16xf32> -> vector<16x16xf32>
    %cst_23 = arith.constant 0.353553385 : f32
    %62 = vector.broadcast %cst_23 : f32 to vector<16x16xf32>
    %63 = arith.mulf %61, %62 : vector<16x16xf32>
    %64 = arith.addf %63, %16 : vector<16x16xf32>
    %cst_24 = arith.constant dense<0xFF800000> : vector<16xf32>
    %65 = vector.multi_reduction <maximumf>, %64, %cst_24 [1] : vector<16x16xf32> to vector<16xf32>
    %66 = vector.shape_cast %65 : vector<16xf32> to vector<16x1xf32>
    %67 = vector.broadcast %66 : vector<16x1xf32> to vector<16x16xf32>
    %68 = arith.subf %64, %67 : vector<16x16xf32>
    %69 = math.exp %68 : vector<16x16xf32>
    %cst_25 = arith.constant dense<0.000000e+00> : vector<16xf32>
    %70 = vector.multi_reduction <add>, %69, %cst_25 [1] : vector<16x16xf32> to vector<16xf32>
    %71 = vector.shape_cast %70 : vector<16xf32> to vector<16x1xf32>
    %72 = tpu.reciprocal %71 : vector<16x1xf32> -> vector<16x1xf32>
    %73 = vector.broadcast %72 : vector<16x1xf32> to vector<16x16xf32>
    %74 = arith.mulf %69, %73 : vector<16x16xf32>
    %cst_26 = arith.constant dense<0.000000e+00> : vector<16x8xf32>
    %75 = tpu.matmul %74, %59, %cst_26 {dimension_numbers = #tpu.dot_dimension_numbers<[1], [0], [0], [1], [0, 0, 1, 1], [], []>} : vector<16x16xf32>, vector<16x8xf32>, vector<16x8xf32> -> vector<16x8xf32>
    %c0_27 = arith.constant 0 : index
    %c16 = arith.constant 16 : index
    %76 = vector.load %arg7[%c0_27, %c16] : memref<16x32xf32, #tpu.memory_space<vmem>>, vector<16x8xf32>
    tpu.vector_store %arg7[%c0_27, %c16], %75 {strides = array<i32>} : memref<16x32xf32, #tpu.memory_space<vmem>>, vector<16x8xf32>,
    %77 = vector.extract_strided_slice %12 {offsets = [0, 24], sizes = [16, 8], strides = [1, 1]} : vector<16x32xf32> to vector<16x8xf32>
    %78 = vector.extract_strided_slice %15 {offsets = [0, 24], sizes = [16, 8], strides = [1, 1]} : vector<16x32xf32> to vector<16x8xf32>
    %79 = vector.extract_strided_slice %5 {offsets = [0, 24], sizes = [16, 8], strides = [1, 1]} : vector<16x32xf32> to vector<16x8xf32>
    %80 = tpu.transpose %78, [1, 0] : vector<16x8xf32> -> vector<8x16xf32>
    %cst_28 = arith.constant dense<0.000000e+00> : vector<16x16xf32>
    %81 = tpu.matmul %77, %80, %cst_28 {dimension_numbers = #tpu.dot_dimension_numbers<[1], [0], [0], [1], [0, 0, 1, 1], [], []>} : vector<16x8xf32>, vector<8x16xf32>, vector<16x16xf32> -> vector<16x16xf32>
    %cst_29 = arith.constant 0.353553385 : f32
    %82 = vector.broadcast %cst_29 : f32 to vector<16x16xf32>
    %83 = arith.mulf %81, %82 : vector<16x16xf32>
    %84 = arith.addf %83, %16 : vector<16x16xf32>
    %cst_30 = arith.constant dense<0xFF800000> : vector<16xf32>
    %85 = vector.multi_reduction <maximumf>, %84, %cst_30 [1] : vector<16x16xf32> to vector<16xf32>
    %86 = vector.shape_cast %85 : vector<16xf32> to vector<16x1xf32>
    %87 = vector.broadcast %86 : vector<16x1xf32> to vector<16x16xf32>
    %88 = arith.subf %84, %87 : vector<16x16xf32>
    %89 = math.exp %88 : vector<16x16xf32>
    %cst_31 = arith.constant dense<0.000000e+00> : vector<16xf32>
    %90 = vector.multi_reduction <add>, %89, %cst_31 [1] : vector<16x16xf32> to vector<16xf32>
    %91 = vector.shape_cast %90 : vector<16xf32> to vector<16x1xf32>
    %92 = tpu.reciprocal %91 : vector<16x1xf32> -> vector<16x1xf32>
    %93 = vector.broadcast %92 : vector<16x1xf32> to vector<16x16xf32>
    %94 = arith.mulf %89, %93 : vector<16x16xf32>
    %cst_32 = arith.constant dense<0.000000e+00> : vector<16x8xf32>
    %95 = tpu.matmul %94, %79, %cst_32 {dimension_numbers = #tpu.dot_dimension_numbers<[1], [0], [0], [1], [0, 0, 1, 1], [], []>} : vector<16x16xf32>, vector<16x8xf32>, vector<16x8xf32> -> vector<16x8xf32>
    %c0_33 = arith.constant 0 : index
    %c24 = arith.constant 24 : index
    %96 = vector.load %arg7[%c0_33, %c24] : memref<16x32xf32, #tpu.memory_space<vmem>>, vector<16x8xf32>
    tpu.vector_store %arg7[%c0_33, %c24], %95 {strides = array<i32>} : memref<16x32xf32, #tpu.memory_space<vmem>>, vector<16x8xf32>,
    %c0_34 = arith.constant 0 : index
    %c0_35 = arith.constant 0 : index
    %97 = vector.load %arg7[%c0_34, %c0_35] : memref<16x32xf32, #tpu.memory_space<vmem>>, vector<16x32xf32>
    %c0_36 = arith.constant 0 : index
    %c0_37 = arith.constant 0 : index
    %98 = vector.load %arg2[%c0_36, %c0_37] : memref<32x32xf32, #tpu.memory_space<vmem>>, vector<32x32xf32>
    %cst_38 = arith.constant dense<0.000000e+00> : vector<16x32xf32>
    %99 = tpu.matmul %97, %98, %cst_38 {dimension_numbers = #tpu.dot_dimension_numbers<[1], [0], [0], [1], [0, 0, 1, 1], [], []>} : vector<16x32xf32>, vector<32x32xf32>, vector<16x32xf32> -> vector<16x32xf32>
    %c0_39 = arith.constant 0 : index
    %c0_40 = arith.constant 0 : index
    %100 = vector.load %arg6[%c0_39, %c0_40] : memref<16x32xf32, #tpu.memory_space<vmem>>, vector<16x32xf32>
    tpu.vector_store %arg6[%c0_39, %c0_40], %99 {strides = array<i32>} : memref<16x32xf32, #tpu.memory_space<vmem>>, vector<16x32xf32>,
    return
  }
}

</mosaic_0001>

<bundles_post_ra>
// kernel: tpu_custom_call.1
= control target key start
LH: loop header
LB: loop body
LE: loop exit
PB: predicated region body
PF: predicated region fallthrough
CT: control target
= control target key end

     0   :  { %11 = vsyncpa [#allocation4], 0  ;;  %s1774_s0 = inlined_call_operand.hbm [shape: f32[16,32], index: 0, kind: input, shape index: {}]   ;;  %s1775_s1 = inlined_call_operand.hbm [shape: f32[32,160], index: 1, kind: input, shape index: {}]   ;;  %s1776_s2 = inlined_call_operand.hbm [shape: f32[32,32], index: 2, kind: input, shape index: {}]   ;;  %s1777_s3 = inlined_call_operand.hbm [shape: f32[16,32], index: 3, kind: input, shape index: {}]   ;;  %s1778_s4 = inlined_call_operand.hbm [shape: f32[16,32], index: 4, kind: input, shape index: {}]   ;;  %s1779_s5 = inlined_call_operand.hbm [shape: f32[16,16], index: 5, kind: input, shape index: {}]   ;;  %s1780_s6 = inlined_call_operand.hbm [shape: f32[16,32], index: 6, kind: output, shape index: {}]  }
   0x1   :  { %12 = vsyncpa [#allocation7], 0 }
   0x2   :  { %13 = vsyncpa [#allocation10], 0 }
   0x3   :  { %14 = vsyncpa [#allocation13], 0 }
   0x4   :  { %15 = vsyncpa [#allocation5], 0  ;;  %s1554_s21 = smov [#allocation6]  }
   0x5   :  { %s33_s22 = sshll.u32 %s1554_s21, 4  ;;  %s34_s22 = int_to_ptr.vmem [resolvable:$true] %s33_s22 }
   0x6   :  { %s1412_s23 = scalar_lea.vmem %s34_s22, 1024  ;;  %p1417_p1 = scmp.lt.s32.totalorder %s34_s22, %s34_s22 }
   0x7   :  { %p1413_p0 = scmp.ne.s32.totalorder %s34_s22, %s1412_s23  ;;  %p1418_p2 = scmp.lt.s32.totalorder %s1412_s23, %s1412_s23 }
   0x9   :  { %p1419_p3 = por %p1418_p2, %p1417_p1 }
   0xb   :  { %p1420_p4 = pnand %p1419_p3, %p1413_p0 }
   0xd   :  { %1423 = shalt.err (!%p1420_p4)
}
   0xe   :  { %s1555_s24 = smov 256   ;;  %s1556_s25 = smov 16  }
   0xf   :  { %39 = dma.hbm_to_vmem [thread:$0]  %s1775_s1, 1024, %s34_s22, [#allocation7], %s1555_s24, %s1555_s24, %s1556_s25  }
  0x10   :  { %s1557_s28 = smov [#allocation9]   ;;  %s1558_s30 = smov [#allocation3]  }
  0x11   :  { %s57_s29 = sshll.u32 %s1557_s28, 4  ;;  %s21_s7 = sshll.u32 %s1558_s30, 4  ;;  %s58_s29 = int_to_ptr.vmem [resolvable:$true] %s57_s29  ;;  %s22_s7 = int_to_ptr.vmem [resolvable:$true] %s21_s7 }
  0x12   :  { %s1432_s8 = scalar_lea.vmem %s58_s29, 256  ;;  %p1437_p6 = scmp.lt.s32.totalorder %s58_s29, %s58_s29 }
  0x13   :  { %p1433_p5 = scmp.ne.s32.totalorder %s58_s29, %s1432_s8  ;;  %p1438_p7 = scmp.lt.s32.totalorder %s1432_s8, %s1432_s8 }
  0x15   :  { %p1439_p8 = por %p1438_p7, %p1437_p6 }
  0x17   :  { %p1440_p9 = pnand %p1439_p8, %p1433_p5 }
  0x19   :  { %1443 = shalt.err (!%p1440_p9)
}
  0x1a   :  { %s1559_s9 = smov 128   ;;  %s1560_s10 = smov 8  }
  0x1b   :  { %63 = dma.hbm_to_vmem [thread:$0]  %s1777_s3, 256, %s58_s29, [#allocation10], %s1559_s9, %s1559_s9, %s1560_s10  }
  0x1c   :  { %s1452_s1 = scalar_lea.vmem %s22_s7, 256  ;;  %p1457_p11 = scmp.lt.s32.totalorder %s22_s7, %s22_s7 }
  0x1d   :  { %p1453_p10 = scmp.ne.s32.totalorder %s22_s7, %s1452_s1  ;;  %p1458_p12 = scmp.lt.s32.totalorder %s1452_s1, %s1452_s1 }
  0x1f   :  { %p1459_p13 = por %p1458_p12, %p1457_p11 }
  0x21   :  { %p1460_p0 = pnand %p1459_p13, %p1453_p10 }
  0x23   :  { %1463 = shalt.err (!%p1460_p0)
}
  0x24   :  { %27 = dma.hbm_to_vmem [thread:$0]  %s1774_s0, 256, %s22_s7, [#allocation4], %s1559_s9, %s1559_s9, %s1560_s10  }
  0x25   :  { %s1561_s15 = smov [#allocation8]   ;;  %s1562_s17 = smov [#allocation11]  }
  0x26   :  { %s45_s16 = sshll.u32 %s1561_s15, 4  ;;  %s69_s3 = sshll.u32 %s1562_s17, 4  ;;  %s46_s16 = int_to_ptr.vmem [resolvable:$true] %s45_s16  ;;  %s70_s3 = int_to_ptr.vmem [resolvable:$true] %s69_s3 }
  0x27   :  { %s1472_s18 = scalar_lea.vmem %s46_s16, 512  ;;  %p1477_p2 = scmp.lt.s32.totalorder %s46_s16, %s46_s16 }
  0x28   :  { %p1473_p1 = scmp.ne.s32.totalorder %s46_s16, %s1472_s18  ;;  %p1478_p3 = scmp.lt.s32.totalorder %s1472_s18, %s1472_s18 }
  0x2a   :  { %p1479_p4 = por %p1478_p3, %p1477_p2 }
  0x2c   :  { %p1480_p5 = pnand %p1479_p4, %p1473_p1 }
  0x2e   :  { %1483 = shalt.err (!%p1480_p5)
}
  0x2f   :  { %51 = dma.hbm_to_vmem [thread:$0]  %s1776_s2, 512, %s46_s16, [#allocation7], %s1559_s9, %s1559_s9, %s1560_s10  }
  0x30   :  { %s1492_s0 = scalar_lea.vmem %s70_s3, 256  ;;  %p1497_p7 = scmp.lt.s32.totalorder %s70_s3, %s70_s3 }
  0x31   :  { %p1493_p6 = scmp.ne.s32.totalorder %s70_s3, %s1492_s0  ;;  %p1498_p8 = scmp.lt.s32.totalorder %s1492_s0, %s1492_s0 }
  0x33   :  { %p1499_p9 = por %p1498_p8, %p1497_p7 }
  0x35   :  { %p1500_p10 = pnand %p1499_p9, %p1493_p6 }
  0x37   :  { %1503 = shalt.err (!%p1500_p10)
}
  0x38   :  { %75 = dma.hbm_to_vmem [thread:$0]  %s1778_s4, 256, %s70_s3, [#allocation10], %s1559_s9, %s1559_s9, %s1560_s10  }
  0x39   :  { %s1563_s23 = smov [#allocation12]  }
  0x3a   :  { %s81_s24 = sshll.u32 %s1563_s23, 4  ;;  %s82_s24 = int_to_ptr.vmem [resolvable:$true] %s81_s24 }
  0x3b   :  { %s1512_s26 = scalar_lea.vmem %s82_s24, 256  ;;  %p1517_p12 = scmp.lt.s32.totalorder %s82_s24, %s82_s24 }
  0x3c   :  { %p1513_p11 = scmp.ne.s32.totalorder %s82_s24, %s1512_s26  ;;  %p1518_p13 = scmp.lt.s32.totalorder %s1512_s26, %s1512_s26 }
  0x3e   :  { %p1519_p0 = por %p1518_p13, %p1517_p12 }
  0x40   :  { %p1520_p1 = pnand %p1519_p0, %p1513_p11 }
  0x42   :  { %1523 = shalt.err (!%p1520_p1)
}
  0x43   :  { %87 = dma.hbm_to_vmem [thread:$0]  %s1779_s5, 256, %s82_s24, [#allocation13], %s1559_s9, %s1559_s9, %s1560_s10  }
  0x44   :  { %1544 = dma.done.wait [#allocation4], 256  }
  0x45   :  { %1545 = vsyncadd [#allocation4], 4294967040 }
  0x46   :  { %1546 = dma.done.wait [#allocation7], 1536  }
  0x47   :  { %1547 = vsyncadd [#allocation7], 4294965760 }
  0x48   :  { %1548 = dma.done.wait [#allocation10], 512  }
  0x49   :  { %1549 = vsyncadd [#allocation10], 4294966784 }
  0x4a   :  { %1550 = dma.done.wait [#allocation13], 256  }
  0x4b   :  { %1551 = vsyncadd [#allocation13], 4294967040  ;;  %v1564_v0 = vmov 0.0   ;;  %v115_v1 = vld [vmem:[#allocation6 + $0x38] sm:$0xff]  ;;  %v114_v2 = vld [vmem:[#allocation6 + $0x30] sm:$0xff]  ;;  %s1565_s4 = smov 96  }
  0x4c   :  { %187 = vmatprep.mubr.f32.mxu0 %v1564_v0  ;;  %v113_v3 = vld [vmem:[#allocation6 + $0x28] sm:$0xff]  ;;  %147 = vmatprep.subr.mxu0 %v115_v1  ;;  %v112_v4 = vld [vmem:[#allocation6 + $0x20] sm:$0xff]  ;;  %v111_v5 = vld [vmem:[#allocation6 + $0x18] sm:$0xff]  ;;  %s1566_s5 = smov 32   ;;  %vm116_vm0 = vcmask 261120   ;;  %vm256_vm1 = vcmask 64512  }
  0x4d   :  { %148 = vmatpush1.msra.mxu0 %v114_v2  ;;  %v110_v6 = vld [vmem:[#allocation6 + $0x10] sm:$0xff]  ;;  %v109_v8 = vld [vmem:[#allocation6 + $0x8] sm:$0xff]  ;;  %v108_v10 = vld [vmem:[#allocation6] sm:$0xff]  ;;  %s1567_s28 = smov 88   ;;  %s1568_s29 = smov 80   ;;  %vm346_vm2 = vcmask 130048  }
  0x4e   :  { %149 = vmatprep.subr.mxu0 %v113_v3  ;;  %v202_v7 = vld [vmem:[#allocation11] sm:$0xff]  ;;  %v201_v9 = vld [vmem:[#allocation9 + $0x8] sm:$0xff]  ;;  %v203_v11 = vld [vmem:[#allocation11 + $0x8] sm:$0xff]  ;;  %s1569_s30 = smov 120   ;;  %s1570_s7 = smov 112   ;;  %vm672_vm3 = vcmask 130112  }
  0x4f   :  { %150 = vmatpush1.msra.mxu0 %v112_v4  ;;  %208 = vrot.lane.b32.xlu0 %v202_v7, %s1565_s4  ;;  %v106_v12 = vld [vmem:[#allocation3] sm:$0xff]  ;;  %v200_v13 = vld [vmem:[#allocation9] sm:$0xff]  ;;  %v107_v14 = vld [vmem:[#allocation3 + $0x8] sm:$0xff]  ;;  %s1571_s8 = smov 64   ;;  %s1572_s11 = smov 56   ;;  %vm887_vm4 = vcmask 195712  }
  0x50   :  { %151 = vmatprep.subr.mxu0 %v111_v5  ;;  %230 = vrot.lane.b32.xlu1 %v201_v9, %s1566_s5  ;;  %v1702_v50 = vld [vmem:[#allocation12 + $0x8] sm:$0xff]  ;;  %v1704_v53 = vld [vmem:[#allocation12] sm:$0xff]  ;;  %s1573_s12 = smov 48   ;;  %s1574_s1 = smov 72   ;;  %vm1102_vm5 = vcmask 261312  }
  0x51   :  { %152 = vmatpush1.msra.mxu0 %v110_v6  ;;  %s1575_s13 = smov 104   ;;  %s1576_s14 = smov 40  }
  0x52   :  { %153 = vmatprep.subr.mxu0 %v109_v8  ;;  %s1578_s15 = smov [#allocation14]  }
  0x53   :  { %154 = vmatpush1.msra.mxu0 %v108_v10  ;;  %210 = vrot.lane.b32.xlu0 %v203_v11, %s1565_s4  ;;  %s1199_s16 = sshll.u32 %s1578_s15, 4  ;;  %s1200_s16 = int_to_ptr.vmem [resolvable:$true] %s1199_s16 }
  0x54   :  { %1214 = vmatmul.mubr.msk.f32.vlgmr.msra.gmra.mxu0 %vm116_vm0, %v106_v12  ;;  %s1524_s17 = scalar_lea.vmem %s1200_s16, 256  ;;  %p1529_p3 = scmp.lt.s32.totalorder %s1200_s16, %s1200_s16 }
  0x55   :  { %193 = vmatprep.mubr.f32.mxu0 %v1564_v0  ;;  %p1525_p2 = scmp.ne.s32.totalorder %s1200_s16, %s1524_s17  ;;  %p1530_p4 = scmp.lt.s32.totalorder %s1524_s17, %s1524_s17 }
  0x57   :  { %228 = vrot.lane.b32.xlu0 %v200_v13, %s1566_s5  ;;  %p1531_p5 = por %p1530_p4, %p1529_p3 }
  0x58   :  { %1215 = vmatmul.mubr.msk.f32.gmra.mxu0 %vm116_vm0, %v107_v14 }
  0x59   :  { %p1532_p6 = pnand %p1531_p5, %p1525_p2 }
  0xc1   :  { %v209_v15 = vpop.permute.xlu0 %208 }
  0xc2   :  { %v231_v29 = vpop.permute.xlu1 %230 }
  0xc5   :  { %v211_v23 = vpop.permute.xlu0 %210 }
  0xc9   :  { %v229_v25 = vpop.permute.xlu0 %228 }
 0x114   :  { %v1652_v16 = vpop.f32.mrf.mxu0 }
 0x115   :  { %v214_v17 = vmul.f32 %v209_v15, %v1652_v16  ;;  %v204_v26 = vmul.f32 %v200_v13, %v1652_v16  ;;  %v234_v33 = vmul.f32 %v229_v25, %v1652_v16 }
 0x116   :  { %v191_v18 = vpop.f32.mrf.mxu0 }
 0x117   :  { %218 = vrot.lane.b32.xlu0 %v214_v17, %s1566_s5  ;;  %v236_v22 = vmul.f32 %v202_v7, %v191_v18 }
 0x118   :  { %v1655_v19 = vpop.f32.mrf.mxu0 }
 0x119   :  { %v215_v24 = vmul.f32 %v211_v23, %v1655_v19  ;;  %v235_v30 = vmul.f32 %v231_v29, %v1655_v19  ;;  %v205_v37 = vmul.f32 %v201_v9, %v1655_v19 }
 0x11a   :  { %v197_v20 = vpop.f32.mrf.mxu0 }
 0x11b   :  { %v237_v21 = vmul.f32 %v203_v11, %v197_v20 }
 0x11d   :  { %242 = vrot.lane.b32.xlu1 %v237_v21, %s1566_s5 }
 0x121   :  { %240 = vrot.lane.b32.xlu1 %v236_v22, %s1566_s5 }
 0x125   :  { %220 = vrot.lane.b32.xlu1 %v215_v24, %s1566_s5 }
 0x189   :  { %v219_v27 = vpop.permute.xlu0 %218 }
 0x18a   :  { %v1659_v28 = vadd.f32 %v219_v27, %v204_v26 }
 0x18c   :  { %1284 = vmatprep.mubr.msk.f32.mxu1 %vm256_vm1, %v1659_v28 }
 0x18f   :  { %v243_v31 = vpop.permute.xlu1 %242 }
 0x190   :  { %v1664_v32 = vadd.f32 %v243_v31, %v235_v30 }
 0x192   :  { %466 = vrot.lane.b32.xlu1 %v1664_v32, %s1567_s28  ;;  %254 = vrot.lane.b32.xlu0 %v1664_v32, %s1565_s4 }
 0x193   :  { %v241_v34 = vpop.permute.xlu1 %240 }
 0x194   :  { %v1670_v35 = vadd.f32 %v241_v34, %v234_v33 }
 0x196   :  { %464 = vrot.lane.b32.xlu1 %v1670_v35, %s1567_s28  ;;  %252 = vrot.lane.b32.xlu0 %v1670_v35, %s1565_s4 }
 0x197   :  { %v221_v36 = vpop.permute.xlu1 %220 }
 0x198   :  { %v1678_v38 = vadd.f32 %v221_v36, %v205_v37 }
 0x19a   :  { %681 = vrot.lane.b32.xlu1 %v1664_v32, %s1568_s29  ;;  %460 = vrot.lane.b32.xlu0 %v1659_v28, %s1569_s30 }
 0x19e   :  { %679 = vrot.lane.b32.xlu1 %v1670_v35, %s1568_s29  ;;  %462 = vrot.lane.b32.xlu0 %v1678_v38, %s1569_s30 }
 0x1a2   :  { %677 = vrot.lane.b32.xlu1 %v1678_v38, %s1570_s7  ;;  %675 = vrot.lane.b32.xlu0 %v1659_v28, %s1570_s7 }
 0x204   :  { %v255_v39 = vpop.permute.xlu0 %254  ;;  %v467_v40 = vpop.permute.xlu1 %466 }
 0x205   :  { %1280 = vmatprep.subr.msk.mxu1 %vm256_vm1, %v255_v39  ;;  %1294 = vmatprep.subr.msk.mxu0 %vm256_vm1, %v467_v40 }
 0x206   :  { %1281 = vmatpush3.xpose.msk.msra.mxu1 %vm256_vm1, %v255_v39  ;;  %1295 = vmatpush3.xpose.msk.msra.mxu0 %vm256_vm1, %v467_v40 }
 0x208   :  { %v253_v41 = vpop.permute.xlu0 %252  ;;  %v465_v42 = vpop.permute.xlu1 %464 }
 0x209   :  { %1282 = vmatprep.subr.msk.mxu1 %vm256_vm1, %v253_v41  ;;  %1296 = vmatprep.subr.msk.mxu0 %vm256_vm1, %v465_v42 }
 0x20a   :  { %1283 = vmatpush3.xpose.msk.msra.mxu1 %vm256_vm1, %v253_v41  ;;  %1297 = vmatpush3.xpose.msk.msra.mxu0 %vm256_vm1, %v465_v42 }
 0x20c   :  { %v461_v43 = vpop.permute.xlu0 %460  ;;  %v682_v44 = vpop.permute.xlu1 %681 }
 0x20d   :  { %1285 = vmatmul.mubr.msk.f32.vlgmr.msra.gmra.mxu1 %vm256_vm1, %v1678_v38  ;;  %1298 = vmatprep.mubr.msk.f32.mxu0 %vm256_vm1, %v461_v43 }
 0x20e   :  { %1308 = vmatprep.subr.msk.mxu0 %vm256_vm1, %v682_v44 }
 0x210   :  { %v463_v45 = vpop.permute.xlu0 %462  ;;  %v680_v46 = vpop.permute.xlu1 %679 }
 0x211   :  { %1299 = vmatmul.mubr.msk.f32.vlgmr.msra.gmra.mxu0 %vm256_vm1, %v463_v45 }
 0x212   :  { %1309 = vmatpush3.xpose.msk.msra.mxu0 %vm256_vm1, %v682_v44 }
 0x213   :  { %1310 = vmatprep.subr.msk.mxu0 %vm256_vm1, %v680_v46 }
 0x214   :  { %v676_v47 = vpop.permute.xlu0 %675  ;;  %v678_v48 = vpop.permute.xlu1 %677 }
 0x215   :  { %1312 = vmatprep.mubr.msk.f32.mxu0 %vm256_vm1, %v676_v47 }
 0x216   :  { %1311 = vmatpush3.xpose.msk.msra.mxu0 %vm256_vm1, %v680_v46 }
 0x219   :  { %1313 = vmatmul.mubr.msk.f32.vlgmr.msra.gmra.mxu0 %vm256_vm1, %v678_v48 }
 0x2cd   :  { %v1286_v49 = vpop.f32.mrf.mxu1 }
 0x2ce   :  { %v343_v51 = vmul.f32 0.35355338, %v1286_v49 }
 0x2cf   :  { %v333_v52 = vpop.f32.mrf.mxu1 }
 0x2d0   :  { %v342_v54 = vmul.f32 0.35355338, %v333_v52  ;;  %v345_v55 = vadd.f32 %v343_v51, %v1702_v50 }
 0x2d1   :  { %v1300_v56 = vpop.f32.mrf.mxu0 }
 0x2d2   :  { %v350_v57 = vsel %vm346_vm2, %v345_v55, -inf  ;;  %v344_v58 = vadd.f32 %v342_v54, %v1704_v53  ;;  %v552_v60 = vmul.f32 0.35355338, %v1300_v56 }
 0x2d3   :  { %351 = vmax.xlane.f32.xlu1 %v350_v57  ;;  %v542_v59 = vpop.f32.mrf.mxu0 }
 0x2d4   :  { %v551_v61 = vmul.f32 0.35355338, %v542_v59  ;;  %v347_v62 = vsel %vm346_vm2, %v344_v58, -inf  ;;  %v554_v1 = vadd.f32 %v552_v60, %v1702_v50 }
 0x2d5   :  { %348 = vmax.xlane.f32.xlu0 %v347_v62 }
 0x2d6   :  { %v553_v63 = vadd.f32 %v551_v61, %v1704_v53  ;;  %v558_v4 = vsel %vm346_vm2, %v554_v1, -inf }
 0x2d8   :  { %v555_v0 = vsel %vm346_vm2, %v553_v63, -inf }
 0x2d9   :  { %v1314_v2 = vpop.f32.mrf.mxu0  ;;  %556 = vmax.xlane.f32.xlu0 %v555_v0 }
 0x2da   :  { %v767_v3 = vmul.f32 0.35355338, %v1314_v2 }
 0x2db   :  { %v757_v7 = vpop.f32.mrf.mxu0 }
 0x2dc   :  { %v769_v5 = vadd.f32 %v767_v3, %v1702_v50  ;;  %v766_v8 = vmul.f32 0.35355338, %v757_v7 }
 0x2dd   :  { %559 = vmax.xlane.f32.xlu0 %v558_v4 }
 0x2de   :  { %v773_v6 = vsel %vm346_vm2, %v769_v5, -inf  ;;  %v768_v9 = vadd.f32 %v766_v8, %v1704_v53 }
 0x2e0   :  { %v770_v10 = vsel %vm346_vm2, %v768_v9, -inf }
 0x2e1   :  { %774 = vmax.xlane.f32.xlu0 %v773_v6 }
 0x2e4   :  { %373 = vrot.lane.b32.xlu1 %v1655_v19, %s1571_s8 }
 0x2e8   :  { %579 = vrot.lane.b32.xlu1 %v1655_v19, %s1572_s11 }
 0x2ec   :  { %577 = vrot.lane.b32.xlu1 %v1652_v16, %s1572_s11 }
 0x2f7   :  { %371 = vrot.lane.b32.xlu0 %v1652_v16, %s1571_s8 }
 0x2fb   :  { %794 = vrot.lane.b32.xlu0 %v1655_v19, %s1573_s12 }
 0x310   :  { %771 = vmax.xlane.f32.xlu1 %v770_v10 }
 0x321   :  { %792 = vrot.lane.b32.xlu1 %v1652_v16, %s1573_s12 }
 0x35c   :  { %v352_v11 = vpop.xlane.xlu1 %351 }
 0x35d   :  { %v354_v12 = vsub.f32 %v345_v55, %v352_v11 }
 0x35e   :  { %v349_v13 = vpop.xlane.xlu0 %348 }
 0x35f   :  { %v357_v14 = vmul.f32 1.442695, %v354_v12  ;;  %v353_v15 = vsub.f32 %v344_v58, %v349_v13 }
 0x360   :  { %v374_v17 = vpop.permute.xlu1 %373 }
 0x361   :  { %1372 = vpow2.f32 %v357_v14  ;;  %v355_v18 = vmul.f32 1.442695, %v353_v15  ;;  %1287 = vmatprep.subr.mxu1 %v374_v17 }
 0x362   :  { %v557_v20 = vpop.xlane.xlu0 %556  ;;  %1288 = vmatpush3.msra.mxu1 %v374_v17 }
 0x363   :  { %1374 = vpow2.f32 %v355_v18  ;;  %v561_v21 = vsub.f32 %v553_v63, %v557_v20 }
 0x364   :  { %v580_v36 = vpop.permute.xlu1 %579 }
 0x365   :  { %v563_v22 = vmul.f32 1.442695, %v561_v21 }
 0x366   :  { %v560_v23 = vpop.xlane.xlu0 %559 }
 0x367   :  { %1376 = vpow2.f32 %v563_v22  ;;  %v562_v24 = vsub.f32 %v554_v1, %v560_v23 }
 0x368   :  { %v578_v45 = vpop.permute.xlu1 %577 }
 0x369   :  { %v565_v25 = vmul.f32 1.442695, %v562_v24 }
 0x36a   :  { %v775_v26 = vpop.xlane.xlu0 %774 }
 0x36b   :  { %1378 = vpow2.f32 %v565_v25  ;;  %v777_v27 = vsub.f32 %v769_v5, %v775_v26 }
 0x36d   :  { %v780_v29 = vmul.f32 1.442695, %v777_v27 }
 0x36e   :  { %v1373_v30 = vpop.eup %1372  ;;  %v372_v31 = vpop.permute.xlu0 %371 }
 0x36f   :  { %1380 = vpow2.f32 %v780_v29  ;;  %1289 = vmatprep.subr.mxu1 %v372_v31  ;;  %v362_v33 = vsel %vm346_vm2, %v1373_v30, 0.0 }
 0x370   :  { %v1375_v34 = vpop.eup %1374  ;;  %363 = vadd.xlane.f32.xlu0 %v362_v33  ;;  %1290 = vmatpush3.msra.mxu1 %v372_v31 }
 0x371   :  { %1301 = vmatprep.subr.mxu1 %v580_v36  ;;  %v359_v37 = vsel %vm346_vm2, %v1375_v34, 0.0 }
 0x372   :  { %360 = vadd.xlane.f32.xlu1 %v359_v37  ;;  %v795_v52 = vpop.permute.xlu0 %794 }
 0x374   :  { %v1377_v39 = vpop.eup %1376 }
 0x375   :  { %v567_v40 = vsel %vm346_vm2, %v1377_v39, 0.0 }
 0x376   :  { %568 = vadd.xlane.f32.xlu1 %v567_v40 }
 0x378   :  { %v1379_v41 = vpop.eup %1378 }
 0x379   :  { %v570_v42 = vsel %vm346_vm2, %v1379_v41, 0.0 }
 0x37a   :  { %571 = vadd.xlane.f32.xlu0 %v570_v42 }
 0x37c   :  { %v1381_v43 = vpop.eup %1380 }
 0x37d   :  { %v785_v44 = vsel %vm346_vm2, %v1381_v43, 0.0 }
 0x37e   :  { %786 = vadd.xlane.f32.xlu0 %v785_v44 }
 0x387   :  { %894 = vrot.lane.b32.xlu1 %v1670_v35, %s1574_s1 }
 0x394   :  { %896 = vrot.lane.b32.xlu0 %v1664_v32, %s1574_s1 }
 0x398   :  { %890 = vrot.lane.b32.xlu0 %v1659_v28, %s1575_s13 }
 0x399   :  { %v772_v46 = vpop.xlane.xlu1 %771 }
 0x39a   :  { %v776_v47 = vsub.f32 %v768_v9, %v772_v46 }
 0x39c   :  { %v778_v48 = vmul.f32 1.442695, %v776_v47 }
 0x39d   :  { %v793_v54 = vpop.permute.xlu1 %792 }
 0x39e   :  { %1382 = vpow2.f32 %v778_v48  ;;  %v1109_v48 = vld [vmem:[#allocation8 + $0x10] sm:$0xff] }
 0x3ab   :  { %v1383_v49 = vpop.eup %1382 }
 0x3ac   :  { %v782_v51 = vsel %vm346_vm2, %v1383_v49, 0.0 }
 0x3ad   :  { %783 = vadd.xlane.f32.xlu1 %v782_v51  ;;  %v1107_v51 = vld [vmem:[#allocation8] sm:$0xff] }
 0x3be   :  { %892 = vrot.lane.b32.xlu1 %v1678_v38, %s1575_s13 }
 0x3f9   :  { %v364_v55 = vpop.xlane.xlu0 %363 }
 0x3fa   :  { %1384 = vrcp.f32 %v364_v55 }
 0x3fb   :  { %v361_v35 = vpop.xlane.xlu1 %360 }
 0x3fc   :  { %1386 = vrcp.f32 %v361_v35 }
 0x3ff   :  { %v569_v32 = vpop.xlane.xlu1 %568 }
 0x400   :  { %1388 = vrcp.f32 %v569_v32 }
 0x403   :  { %v572_v56 = vpop.xlane.xlu0 %571  ;;  %v895_v1 = vpop.permute.xlu1 %894 }
 0x404   :  { %1390 = vrcp.f32 %v572_v56 }
 0x407   :  { %v1385_v28 = vpop.eup %1384  ;;  %v787_v62 = vpop.xlane.xlu0 %786 }
 0x408   :  { %v368_v59 = vmul.f32 %v1385_v28, %v1373_v30  ;;  %1392 = vrcp.f32 %v787_v62 }
 0x409   :  { %v1387_v57 = vpop.eup %1386 }
 0x40a   :  { %v367_v58 = vmul.f32 %v1387_v57, %v1375_v34 }
 0x40b   :  { %v897_v0 = vpop.permute.xlu0 %896 }
 0x40c   :  { %1291 = vmatprep.mubr.msk.f32.mxu1 %vm346_vm2, %v367_v58 }
 0x40d   :  { %v1389_v60 = vpop.eup %1388  ;;  %1292 = vmatmul.mubr.msk.f32.vlgmr.msra.gmra.mxu1 %vm346_vm2, %v368_v59 }
 0x40e   :  { %1302 = vmatpush3.msra.mxu1 %v580_v36  ;;  %v575_v38 = vmul.f32 %v1389_v60, %v1377_v39 }
 0x40f   :  { %1303 = vmatprep.subr.mxu1 %v578_v45  ;;  %v891_v7 = vpop.permute.xlu0 %890 }
 0x410   :  { %1304 = vmatpush3.msra.mxu1 %v578_v45  ;;  %1305 = vmatprep.mubr.msk.f32.mxu1 %vm346_vm2, %v575_v38 }
 0x411   :  { %v1391_v61 = vpop.eup %1390  ;;  %1315 = vmatprep.subr.mxu1 %v795_v52 }
 0x412   :  { %v576_v63 = vmul.f32 %v1391_v61, %v1379_v41 }
 0x414   :  { %1306 = vmatmul.mubr.msk.f32.vlgmr.msra.gmra.mxu1 %vm346_vm2, %v576_v63 }
 0x415   :  { %1316 = vmatpush3.msra.mxu1 %v795_v52  ;;  %v1393_v3 = vpop.eup %1392 }
 0x416   :  { %1317 = vmatprep.subr.mxu1 %v793_v54  ;;  %v791_v6 = vmul.f32 %v1393_v3, %v1381_v43 }
 0x417   :  { %1318 = vmatpush3.msra.mxu1 %v793_v54 }
 0x418   :  { %1322 = vmatprep.subr.msk.mxu1 %vm256_vm1, %v897_v0 }
 0x436   :  { %v784_v2 = vpop.xlane.xlu1 %783 }
 0x437   :  { %1394 = vrcp.f32 %v784_v2 }
 0x43a   :  { %v893_v8 = vpop.permute.xlu1 %892 }
 0x444   :  { %v1395_v4 = vpop.eup %1394 }
 0x445   :  { %v790_v5 = vmul.f32 %v1395_v4, %v1383_v49  ;;  %v1108_v49 = vld [vmem:[#allocation8 + $0x8] sm:$0xff] }
 0x447   :  { %1319 = vmatprep.mubr.msk.f32.mxu1 %vm346_vm2, %v790_v5 }
 0x448   :  { %1320 = vmatmul.mubr.msk.f32.vlgmr.msra.gmra.mxu1 %vm346_vm2, %v791_v6 }
 0x449   :  { %1323 = vmatpush3.xpose.msk.msra.mxu1 %vm256_vm1, %v897_v0  ;;  %1326 = vmatprep.mubr.msk.f32.mxu1 %vm256_vm1, %v891_v7 }
 0x44a   :  { %1324 = vmatprep.subr.msk.mxu1 %vm256_vm1, %v895_v1 }
 0x44d   :  { %1325 = vmatpush3.xpose.msk.msra.mxu1 %vm256_vm1, %v895_v1 }
 0x450   :  { %1327 = vmatmul.mubr.msk.f32.vlgmr.msra.gmra.mxu1 %vm256_vm1, %v893_v8 }
 0x4cd   :  { %v1293_v9 = vpop.f32.mrf.mxu1 }
 0x4ce   :  { %459 = vst.msk [vmem:[#allocation2 + $0x8] sm:$0xff] %vm256_vm1, %v1293_v9 }
 0x4cf   :  { %v449_v10 = vpop.f32.mrf.mxu1 }
 0x4d0   :  { %458 = vst.msk [vmem:[#allocation2] sm:$0xff] %vm256_vm1, %v449_v10 }
 0x4d4   :  { %v1307_v11 = vpop.f32.mrf.mxu1 }
 0x4d6   :  { %v655_v12 = vpop.f32.mrf.mxu1 }
 0x508   :  { %v1321_v13 = vpop.f32.mrf.mxu1 }
 0x50a   :  { %v870_v14 = vpop.f32.mrf.mxu1 }
 0x510   :  { %v1328_v15 = vpop.f32.mrf.mxu1 }
 0x511   :  { %v982_v17 = vmul.f32 0.35355338, %v1328_v15 }
 0x512   :  { %v972_v18 = vpop.f32.mrf.mxu1 }
 0x513   :  { %v981_v20 = vmul.f32 0.35355338, %v972_v18  ;;  %v984_v21 = vadd.f32 %v982_v17, %v1702_v50 }
 0x515   :  { %v988_v22 = vsel %vm346_vm2, %v984_v21, -inf  ;;  %v983_v23 = vadd.f32 %v981_v20, %v1704_v53 }
 0x516   :  { %989 = vmax.xlane.f32.xlu1 %v988_v22 }
 0x517   :  { %v985_v24 = vsel %vm346_vm2, %v983_v23, -inf }
 0x518   :  { %986 = vmax.xlane.f32.xlu0 %v985_v24 }
 0x527   :  { %1009 = vrot.lane.b32.xlu1 %v1655_v19, %s1576_s14 }
 0x52b   :  { %666 = vrot.lane.b32.xlu1 %v655_v12, %s1560_s10 }
 0x52f   :  { %668 = vrot.lane.b32.xlu1 %v1307_v11, %s1560_s10 }
 0x533   :  { %883 = vrot.lane.b32.xlu1 %v1321_v13, %s1556_s25 }
 0x59f   :  { %v990_v25 = vpop.xlane.xlu1 %989 }
 0x5a0   :  { %v992_v26 = vsub.f32 %v984_v21, %v990_v25 }
 0x5a1   :  { %v987_v50 = vpop.xlane.xlu0 %986 }
 0x5a2   :  { %v995_v27 = vmul.f32 1.442695, %v992_v26  ;;  %v991_v29 = vsub.f32 %v983_v23, %v987_v50 }
 0x5a3   :  { %v1010_v30 = vpop.permute.xlu1 %1009 }
 0x5a4   :  { %1396 = vpow2.f32 %v995_v27  ;;  %v993_v53 = vmul.f32 1.442695, %v991_v29  ;;  %1329 = vmatprep.subr.mxu1 %v1010_v30 }
 0x5a5   :  { %1330 = vmatpush3.msra.mxu1 %v1010_v30 }
 0x5a6   :  { %1398 = vpow2.f32 %v993_v53 }
 0x5a7   :  { %v667_v31 = vpop.permute.xlu1 %666 }
 0x5a8   :  { %673 = vst.msk [vmem:[#allocation2] sm:$0xff] %vm672_vm3, %v667_v31 }
 0x5ab   :  { %v669_v19 = vpop.permute.xlu1 %668 }
 0x5ac   :  { %674 = vst.msk [vmem:[#allocation2 + $0x8] sm:$0xff] %vm672_vm3, %v669_v19 }
 0x5af   :  { %v884_v33 = vpop.permute.xlu1 %883 }
 0x5b0   :  { %889 = vst.msk [vmem:[#allocation2 + $0x8] sm:$0xff] %vm887_vm4, %v884_v33 }
 0x5b1   :  { %v1397_v34 = vpop.eup %1396 }
 0x5b2   :  { %v1000_v36 = vsel %vm346_vm2, %v1397_v34, 0.0 }
 0x5b3   :  { %v1399_v37 = vpop.eup %1398  ;;  %1001 = vadd.xlane.f32.xlu0 %v1000_v36 }
 0x5b4   :  { %v997_v39 = vsel %vm346_vm2, %v1399_v37, 0.0 }
 0x5b7   :  { %998 = vadd.xlane.f32.xlu0 %v997_v39 }
 0x5cd   :  { %1007 = vrot.lane.b32.xlu0 %v1652_v16, %s1576_s14  ;;  %v1110_v16 = vld [vmem:[#allocation8 + $0x18] sm:$0xff] }
 0x5ce   :  { %1336 = vmatprep.subr.mxu0 %v1110_v16 }
 0x5cf   :  { %1337 = vmatpush3.msra.mxu0 %v1110_v16 }
 0x5d0   :  { %1338 = vmatprep.subr.mxu0 %v1109_v48 }
 0x5d1   :  { %881 = vrot.lane.b32.xlu0 %v870_v14, %s1556_s25  ;;  %1339 = vmatpush3.msra.mxu0 %v1109_v48  ;;  %s1577_s25 = smov 24  }
 0x5d2   :  { %1340 = vmatprep.subr.mxu0 %v1108_v49 }
 0x5d3   :  { %1341 = vmatpush3.msra.mxu0 %v1108_v49 }
 0x5d4   :  { %1342 = vmatprep.subr.mxu0 %v1107_v51 }
 0x5d5   :  { %1343 = vmatpush3.msra.mxu0 %v1107_v51 }
 0x63c   :  { %v1002_v40 = vpop.xlane.xlu0 %1001 }
 0x63d   :  { %1400 = vrcp.f32 %v1002_v40 }
 0x640   :  { %v999_v41 = vpop.xlane.xlu0 %998 }
 0x641   :  { %1402 = vrcp.f32 %v999_v41 }
 0x644   :  { %v1008_v42 = vpop.permute.xlu0 %1007 }
 0x645   :  { %1331 = vmatprep.subr.mxu1 %v1008_v42 }
 0x646   :  { %1332 = vmatpush3.msra.mxu1 %v1008_v42 }
 0x648   :  { %v882_v43 = vpop.permute.xlu0 %881 }
 0x649   :  { %888 = vst.msk [vmem:[#allocation2] sm:$0xff] %vm887_vm4, %v882_v43 }
 0x64a   :  { %v1401_v44 = vpop.eup %1400 }
 0x64b   :  { %v1006_v47 = vmul.f32 %v1401_v44, %v1397_v34 }
 0x64e   :  { %v1403_v45 = vpop.eup %1402 }
 0x64f   :  { %v1005_v46 = vmul.f32 %v1403_v45, %v1399_v37 }
 0x651   :  { %1333 = vmatprep.mubr.msk.f32.mxu1 %vm346_vm2, %v1005_v46 }
 0x652   :  { %1334 = vmatmul.mubr.msk.f32.vlgmr.msra.gmra.mxu1 %vm346_vm2, %v1006_v47 }
 0x712   :  { %v1335_v52 = vpop.f32.mrf.mxu1 }
 0x713   :  { %1098 = vrot.lane.b32.xlu1 %v1335_v52, %s1577_s25 }
 0x714   :  { %v1085_v54 = vpop.f32.mrf.mxu1 }
 0x715   :  { %1096 = vrot.lane.b32.xlu0 %v1085_v54, %s1577_s25 }
 0x785   :  { %v1099_v55 = vpop.permute.xlu1 %1098 }
 0x786   :  { %1104 = vst.msk [vmem:[#allocation2 + $0x8] sm:$0xff] %vm1102_vm5, %v1099_v55 }
 0x787   :  { %v1097_v35 = vpop.permute.xlu0 %1096 }
 0x788   :  { %1103 = vst.msk [vmem:[#allocation2] sm:$0xff] %vm1102_vm5, %v1097_v35 }
 0x78d   :  { %v1106_v56 = vld [vmem:[#allocation2 + $0x8] sm:$0xff] }
 0x78f   :  { %v1105_v32 = vld [vmem:[#allocation2] sm:$0xff] }
 0x790   :  { %1344 = vmatprep.mubr.msk.f32.mxu0 %vm116_vm0, %v1105_v32 }
 0x791   :  { %1345 = vmatmul.mubr.msk.f32.vlgmr.msra.gmra.mxu0 %vm116_vm0, %v1106_v56 }
 0x851   :  { %v1346_v28 = vpop.f32.mrf.mxu0 }
 0x852   :  { %1193 = vst.msk [vmem:[#allocation14 + $0x8] sm:$0xff] %vm116_vm0, %v1346_v28 }
 0x853   :  { %v1183_v57 = vpop.f32.mrf.mxu0 }
 0x854   :  { %1192 = vst.msk [vmem:[#allocation14] sm:$0xff] %vm116_vm0, %v1183_v57 }
 0x855   :  { %1535 = shalt.err (!%p1532_p6)
}
 0x856   :  { %1205 = dma.vmem_to_hbm [thread:$0]  %s1200_s16, 256, %s1780_s6, [#allocation5], %s1559_s9, %s1559_s9, %s1560_s10  }
 0x857   :  { %1552 = dma.done.wait [#allocation5], 256  }
 0x858   :  { %1553 = vsyncadd [#allocation5], 4294967040 }
 0x859   :  { %1209 = vsyncpa [#allocation4], 1 }
 0x85a   :  { %1210 = vsyncpa [#allocation7], 1 }
 0x85b   :  { %1211 = vsyncpa [#allocation10], 1 }
 0x85c   :  { %1212 = vsyncpa [#allocation13], 1 }
 0x85d   :  { %1213 = vsyncpa [#allocation5], 1 }

</bundles_post_ra>
